<compile_context>
chip_gen: v7x
topology: tpu7x:2x2x1
jax: 0.10.0
libtpu: 0.0.40
codegen_flags: <defaults>
</compile_context>

<pallas_src>
import math
import functools

import jax
import jax.numpy as jnp
from jax.experimental import pallas as pl
from jax.experimental.pallas import tpu as pltpu


def make_sinusoidal_pe(max_len: int, d_model: int, dtype=jnp.float32) -> jnp.ndarray:
    """Deterministic sinusoidal positional-encoding table, shape (max_len, d_model)."""
    position = jnp.arange(max_len, dtype=jnp.float32)[:, None]                      # (max_len, 1)
    div_term = jnp.exp(
        jnp.arange(0, d_model, 2, dtype=jnp.float32) * (-math.log(10000.0) / d_model)
    )                                                                                # (d_model//2,)
    angles = position * div_term                                                     # (max_len, d_model//2)
    pe = jnp.zeros((max_len, d_model), dtype=jnp.float32)
    pe = pe.at[:, 0::2].set(jnp.sin(angles))
    pe = pe.at[:, 1::2].set(jnp.cos(angles))
    return pe.astype(dtype)


# ---------------------------------------------------------------------------
# Kernels (operate on flattened 2-D blocks: x/out (TB, LT), pe (1, LT))
# ---------------------------------------------------------------------------

def _posenc_eval_kernel(x_ref, pe_ref, o_ref):
    # f32 math (matches PyTorch promotion of x + f32 pe); cast only at the store.
    y = x_ref[...].astype(jnp.float32) + pe_ref[...].astype(jnp.float32)
    o_ref[...] = y.astype(o_ref.dtype)


def _posenc_dropout_prng_kernel(seed_ref, x_ref, pe_ref, o_ref, *, dropout_p: float):
    """Training path: inverted dropout with in-kernel hardware PRNG."""
    # Distinct PRNG stream per grid block: mix the block id into the seed.
    block_id = pl.program_id(0) * pl.num_programs(1) + pl.program_id(1)
    pltpu.prng_seed(seed_ref[0], block_id)
    # bitcast makes the compare dtype-stable whether prng_random_bits yields i32 or u32.
    bits = pltpu.bitcast(pltpu.prng_random_bits(x_ref.shape), jnp.uint32)
    thresh = jnp.uint32(min(int(dropout_p * (2 ** 32)), 2 ** 32 - 1))
    keep = bits >= thresh                                    # P(keep) = 1 - p
    y = x_ref[...].astype(jnp.float32) + pe_ref[...].astype(jnp.float32)
    scale = jnp.float32(1.0 / (1.0 - dropout_p))
    o_ref[...] = jnp.where(keep, y * scale, 0.0).astype(o_ref.dtype)


def _posenc_dropout_hostbits_kernel(x_ref, pe_ref, bits_ref, o_ref, *, dropout_p: float):
    """Fallback training path (non-TPU / interpret): host-generated uint8 mask."""
    y = x_ref[...].astype(jnp.float32) + pe_ref[...].astype(jnp.float32)
    thresh = jnp.uint8(min(int(round(dropout_p * 256.0)), 255))
    keep = bits_ref[...] >= thresh                           # P(keep) ~= 1 - p (1/256 granularity)
    scale = jnp.float32(1.0 / (1.0 - dropout_p))
    o_ref[...] = jnp.where(keep, y * scale, 0.0).astype(o_ref.dtype)


# ---------------------------------------------------------------------------
# Per-generation tuning + tiling helpers
# ---------------------------------------------------------------------------

def _chip_tuning():
    """Returns (per-block target bytes, vmem_limit_bytes or None, has_two_tensorcores)."""
    kind = ""
    try:
        dev = jax.devices()[0]
        if dev.platform == "tpu":
            kind = getattr(dev, "device_kind", "").lower()
    except Exception:
        pass
    if "7" in kind:
        # v7x: ~3.2 TB/s HBM, 64 MiB physical VMEM (32 MiB scoped default), 2 TCs.
        return 4 << 20, 48 << 20, True
    if "v6" in kind or "6e" in kind:
        # v6e: ~2 MiB tiles reach ~86-90% of roofline; well under 32 MiB scoped default.
        return 2 << 20, 32 << 20, False
    if "v5 lite" in kind or "v5e" in kind or "v5lite" in kind:
        # v5e: 16 MiB scoped VMEM default -- keep blocks at ~1 MiB, leave the default limit.
        return 1 << 20, None, False
    return 2 << 20, 32 << 20, False


def _choose_tiles(B: int, L: int, itemsize: int, target_bytes: int, force_split: bool):
    """Pick (LT, TB) lane/row block sizes targeting ~target_bytes per block."""
    # Lane tile: full L when small or unaligned, else a big multiple of 128 that keeps
    # at least 8 rows per block.
    lane_target = max(4096, target_bytes // (8 * max(itemsize, 1)))
    if L <= lane_target or L % 128 != 0:
        LT = L
    else:
        LT = (min(lane_target, L) // 128) * 128
    # Row tile: pack rows until the block is ~target_bytes; keep it 8-aligned or full.
    rows = max(1, target_bytes // max(LT * itemsize, 1))
    if B <= rows:
        TB = B
    elif rows >= 8:
        TB = (rows // 8) * 8
    else:
        TB = B if B < 8 else 8
    # v7x has 2 TensorCores: make sure the (parallel) grid has >= 2 blocks when it
    # can be split without violating the (8, 128) block-shape alignment rules.
    if force_split and pl.cdiv(L, LT) * pl.cdiv(B, TB) < 2:
        if L >= 256 and L % 256 == 0:
            LT = L // 2
        elif B >= 16 and B % 16 == 0:
            TB = B // 2
    return LT, TB


# ---------------------------------------------------------------------------
# Public wrapper
# ---------------------------------------------------------------------------

def positional_encoding(x: jnp.ndarray,
                        pe_table: jnp.ndarray,
                        *,
                        dropout_p: float = 0.1,
                        training: bool = False,
                        rng_key=None,
                        use_host_rng=None,
                        donate_x: bool = False) -> jnp.ndarray:
    """dropout(x + pe[:T]) for x of shape (B, T, D); pe_table of shape (max_len, D)."""
    B, T, D = x.shape
    assert pe_table.shape[0] >= T and pe_table.shape[1] == D

    apply_dropout = bool(training) and dropout_p > 0.0
    if apply_dropout and dropout_p >= 1.0:
        return jnp.zeros_like(x)  # nn.Dropout(p=1.0) zeroes everything
    if apply_dropout and rng_key is None:
        raise ValueError("positional_encoding: training with dropout_p>0 requires an explicit rng_key")

    # Flatten to a lane-dense 2-D layout: (B, T*D).  The add/dropout is elementwise,
    # so this is pure layout plumbing (undone at the end).
    L = T * D
    x2 = x.reshape(B, L)
    pe2 = pe_table[:T, :].astype(jnp.float32).reshape(1, L)

    if use_host_rng is None:
        # In-kernel HW PRNG on real TPUs; host-generated mask only for non-TPU backends.
        use_host_rng = jax.default_backend() != "tpu"

    target_bytes, vmem_limit, two_tc = _chip_tuning()
    LT, TB = _choose_tiles(B, L, x.dtype.itemsize, target_bytes, force_split=two_tc)
    # Lane axis OUTER, row axis INNER: the PE block index is constant over the inner
    # sweep, so Pallas skips re-DMAing it every step.
    grid = (pl.cdiv(L, LT), pl.cdiv(B, TB))

    x_spec = pl.BlockSpec((TB, LT), lambda j, i: (i, j))
    pe_spec = pl.BlockSpec((1, LT), lambda j, i: (0, j))
    out_spec = pl.BlockSpec((TB, LT), lambda j, i: (i, j))

    compiler_params = pltpu.CompilerParams(
        dimension_semantics=("parallel", "parallel"),
        vmem_limit_bytes=vmem_limit)

    if not apply_dropout:
        kernel = _posenc_eval_kernel
        in_specs = [x_spec, pe_spec]
        operands = (x2, pe2)
        io_aliases = {0: 0} if donate_x else {}
    elif use_host_rng:
        # Interpret/testing fallback: uint8 mask (1 B/elem instead of 4 B/elem).
        bits = jax.random.bits(rng_key, (B, L), dtype=jnp.uint8)
        kernel = functools.partial(_posenc_dropout_hostbits_kernel, dropout_p=float(dropout_p))
        in_specs = [x_spec, pe_spec, pl.BlockSpec((TB, LT), lambda j, i: (i, j))]
        operands = (x2, pe2, bits)
        io_aliases = {0: 0} if donate_x else {}
    else:
        # Default training path: seed lives in SMEM, mask generated in-kernel.
        seed = jax.random.randint(rng_key, (1,), 0, jnp.iinfo(jnp.int32).max, dtype=jnp.int32)
        kernel = functools.partial(_posenc_dropout_prng_kernel, dropout_p=float(dropout_p))
        in_specs = [pl.BlockSpec(memory_space=pltpu.MemorySpace.SMEM), x_spec, pe_spec]
        operands = (seed, x2, pe2)
        io_aliases = {1: 0} if donate_x else {}

    out2 = pl.pallas_call(
        kernel,
        out_shape=jax.ShapeDtypeStruct((B, L), x.dtype),
        grid=grid,
        in_specs=in_specs,
        out_specs=out_spec,
        compiler_params=compiler_params,
        input_output_aliases=io_aliases,
    )(*operands)

    return out2.reshape(B, T, D)


if __name__ == "__main__":
    # Small shapes consistent with the module's forward: (B, T, d_model)
    B, T, D = 2, 8, 32
    MAX_LEN = 64

    key = jax.random.PRNGKey(0)
    kx, kdrop = jax.random.split(key)
    x = jax.random.normal(kx, (B, T, D), dtype=jnp.float32)
    pe = make_sinusoidal_pe(MAX_LEN, D)

    # Eval mode (dropout = identity) — must match the reference exactly.
    out_eval = positional_encoding(x, pe, dropout_p=0.1, training=False)
    out_eval = jax.block_until_ready(out_eval)
    ref = x + pe[:T, :][None, :, :]
    assert out_eval.shape == (B, T, D)
    assert jnp.allclose(out_eval, ref, atol=1e-6, rtol=1e-6)

    # Train mode — exercises the dropout path (in-kernel HW PRNG on TPU, host-mask
    # fallback otherwise).  Every element is either exactly 0 (dropped) or
    # ref / (1 - p) (kept & rescaled).
    p = 0.1
    out_train = positional_encoding(x, pe, dropout_p=p, training=True, rng_key=kdrop)
    out_train = jax.block_until_ready(out_train)
    assert out_train.shape == (B, T, D)
    kept_ok = jnp.isclose(out_train, ref / (1.0 - p), atol=1e-5, rtol=1e-5)
    ok = kept_ok | (out_train == 0.0)
    assert bool(jnp.all(ok))

    print("KERNEL_OK")
</pallas_src>

<mosaic_0001>
module attributes {stable_mosaic.version = 11 : i64} {
  func.func @_posenc_eval_kernel(%arg0: i32, %arg1: i32, %arg2: memref<2x256xf32, #tpu.memory_space<vmem>>, %arg3: memref<1x256xf32, #tpu.memory_space<vmem>>, %arg4: memref<2x256xf32, #tpu.memory_space<vmem>>) attributes {dimension_semantics = [#tpu.dimension_semantics<parallel>, #tpu.dimension_semantics<parallel>], iteration_bounds = array<i64: 1, 1>, scalar_prefetch = 0 : i64, scratch_operands = 0 : i64, tpu.core_type = #tpu.core_type<tc>, window_params = [{transform_indices = @transform_0, window_bounds = array<i64: 2, 256>}, {transform_indices = @transform_1, window_bounds = array<i64: 1, 256>}, {transform_indices = @transform_2, window_bounds = array<i64: 2, 256>}]} {
    %c0 = arith.constant 0 : index
    %c0_0 = arith.constant 0 : index
    %0 = vector.load %arg2[%c0, %c0_0] : memref<2x256xf32, #tpu.memory_space<vmem>>, vector<2x256xf32>
    %c0_1 = arith.constant 0 : index
    %c0_2 = arith.constant 0 : index
    %1 = vector.load %arg3[%c0_1, %c0_2] : memref<1x256xf32, #tpu.memory_space<vmem>>, vector<1x256xf32>
    %2 = vector.broadcast %1 : vector<1x256xf32> to vector<2x256xf32>
    %3 = arith.addf %0, %2 : vector<2x256xf32>
    %c0_3 = arith.constant 0 : index
    %c0_4 = arith.constant 0 : index
    %4 = vector.load %arg4[%c0_3, %c0_4] : memref<2x256xf32, #tpu.memory_space<vmem>>, vector<2x256xf32>
    tpu.vector_store %arg4[%c0_3, %c0_4], %3 {strides = array<i32>} : memref<2x256xf32, #tpu.memory_space<vmem>>, vector<2x256xf32>,
    return
  }
  func.func @transform_0(%arg0: i32, %arg1: i32) -> (i32, i32) {
    %c0_i32 = arith.constant 0 : i32
    return %arg1, %arg0 : i32, i32
  }
  func.func @transform_1(%arg0: i32, %arg1: i32) -> (i32, i32) {
    %c0_i32 = arith.constant 0 : i32
    %c0_i32_0 = arith.constant 0 : i32
    return %c0_i32, %arg0 : i32, i32
  }
  func.func @transform_2(%arg0: i32, %arg1: i32) -> (i32, i32) {
    %c0_i32 = arith.constant 0 : i32
    return %arg1, %arg0 : i32, i32
  }
}

</mosaic_0001>

<bundles_post_ra>
// kernel: tpu_custom_call.1
= control target key start
LH: loop header
LB: loop body
LE: loop exit
PB: predicated region body
PF: predicated region fallthrough
CT: control target
= control target key end

     0   :  { %7 = vsyncpa [#allocation3], 0  ;;  %s157_s0 = inlined_call_operand.hbm [shape: f32[2,256], index: 0, kind: input, shape index: {}]   ;;  %s158_s1 = inlined_call_operand.vmem [shape: f32[1,256], index: 1, kind: input, shape index: {}]   ;;  %s159_s2 = inlined_call_operand.hbm [shape: f32[2,256], index: 2, kind: output, shape index: {}]  }
   0x1   :  { %8 = vsyncpa [#allocation4], 0  ;;  %s112_s9 = smov [#allocation2]   ;;  %s64_s13 = scalar_lea.hbm %s157_s0, 64 }
   0x2   :  { %s15_s10 = sshll.u32 %s112_s9, 4  ;;  %p65_p0 = scmp.ne.s32.totalorder %s157_s0, %s64_s13  ;;  %s16_s10 = int_to_ptr.vmem [resolvable:$true] %s15_s10 }
   0x3   :  { %p68_p1 = scmp.lt.u32.totalorder %s64_s13, %s157_s0 }
   0x5   :  { %p70_p2 = pnand %p68_p1, %p65_p0 }
   0x7   :  { %73 = shalt.err (!%p70_p2)
}
   0x8   :  { %s74_s18 = scalar_lea.vmem %s16_s10, 64  ;;  %p79_p4 = scmp.lt.s32.totalorder %s16_s10, %s16_s10 }
   0x9   :  { %p75_p3 = scmp.ne.s32.totalorder %s16_s10, %s74_s18  ;;  %p80_p5 = scmp.lt.s32.totalorder %s74_s18, %s74_s18 }
   0xb   :  { %p81_p6 = por %p80_p5, %p79_p4 }
   0xd   :  { %p82_p7 = pnand %p81_p6, %p75_p3 }
   0xf   :  { %85 = shalt.err (!%p82_p7)
}
  0x10   :  { %18 = dma.hbm_to_vmem [thread:$0]  %s157_s0, 64, %s16_s10, [#allocation3]  }
  0x11   :  { %108 = dma.done.wait [#allocation3], 64  }
  0x12   :  { %109 = vsyncadd [#allocation3], 4294967232  ;;  %v27_v0 = vlaneseq  ;;  %v113_v1 = vmov 1983009808   ;;  %v25_v7 = vld [vmem:[%s158_s1] sm:$0x3] }
  0x13   :  { %v37_v2 = vunpack.c.l.s4 %v113_v1  ;;  %v24_v12 = vld [vmem:[#allocation2] sm:$0xf]  ;;  %s114_s23 = smov [#allocation5]  }
  0x14   :  { %v28_v3 = vshrl.u32 %v27_v0, 7  ;;  %s52_s0 = sshll.u32 %s114_s23, 4  ;;  %s53_s0 = int_to_ptr.vmem [resolvable:$true] %s52_s0 }
  0x15   :  { %v38_v6 = vunpack.c.0.s8 %v37_v2  ;;  %s86_s24 = scalar_lea.vmem %s53_s0, 64  ;;  %p91_p9 = scmp.lt.s32.totalorder %s53_s0, %s53_s0 }
  0x16   :  { %v29_v4 = vsub.s32 0, %v28_v3  ;;  %v33_v5 = vsub.s32 1, %v28_v3  ;;  %p87_p8 = scmp.ne.s32.totalorder %s53_s0, %s86_s24  ;;  %p92_p10 = scmp.lt.s32.totalorder %s86_s24, %s86_s24 }
  0x17   :  { %v41_v10 = vsub.s32 %v38_v6, %v28_v3 }
  0x18   :  { %v30_v8 = vrot.slane %v25_v7, %v29_v4  ;;  %v34_v9 = vrot.slane %v25_v7, %v33_v5  ;;  %p93_p11 = por %p92_p10, %p91_p9 }
  0x1a   :  { %v35_v11 = vcombine.low %v30_v8, %v34_v9  ;;  %p94_p12 = pnand %p93_p11, %p87_p8 }
  0x1c   :  { %v42_v13 = vrot.slane %v35_v11, %v41_v10 }
  0x1e   :  { %v44_v14 = vadd.f32 %v42_v13, %v24_v12 }
  0x20   :  { %45 = vst [vmem:[#allocation5] sm:$0xf] %v44_v14 }
  0x21   :  { %97 = shalt.err (!%p94_p12)
}
  0x22   :  { %s98_s26 = scalar_lea.hbm %s159_s2, 64 }
  0x23   :  { %p99_p13 = scmp.ne.s32.totalorder %s159_s2, %s98_s26  ;;  %p102_p0 = scmp.lt.u32.totalorder %s98_s26, %s159_s2 }
  0x25   :  { %p104_p1 = pnand %p102_p0, %p99_p13 }
  0x27   :  { %107 = shalt.err (!%p104_p1)
}
  0x28   :  { %55 = dma.vmem_to_hbm [thread:$0]  %s53_s0, 64, %s159_s2, [#allocation4]  }
  0x29   :  { %110 = dma.done.wait [#allocation4], 64  }
  0x2a   :  { %111 = vsyncadd [#allocation4], 4294967232 }
  0x2b   :  { %59 = vsyncpa [#allocation3], 1 }
  0x2c   :  { %60 = vsyncpa [#allocation4], 1 }

</bundles_post_ra>
